<compile_context>
chip_gen: v6e
topology: v6e:2x2x1
jax: 0.10.0
libtpu: 0.0.40
codegen_flags: <defaults>
</compile_context>

<pallas_src>
import functools
import math

import jax
import jax.numpy as jnp
from jax.experimental import pallas as pl
from jax.experimental.pallas import tpu as pltpu


def _split_kernel(x_ref, *o_refs, sizes):
    # x_ref:     (1, C, TT)            -- full channel extent, one trail tile
    # o_refs[k]: (1, sizes[k], TT)     -- k-th output chunk, same trail tile
    off = 0
    for o_ref, sz in zip(o_refs, sizes):
        o_ref[...] = x_ref[:, off:off + sz, :]   # static slice -> plain copy
        off += sz


def _choose_trail_tile(c, trail, itemsize, budget_bytes=8 << 20):
    """Largest trail tile whose double-buffered in+out footprint fits a
    conservative VMEM budget (sized for v7x's smaller 64 MiB VMEM).
    Prefers the full trail; otherwise the largest 128-multiple divisor."""
    full_cost = 4 * c * trail * itemsize          # ~ (in + out) double-buffered
    if full_cost <= budget_bytes or trail <= 128:
        return trail
    best = None
    cand = 128
    while cand <= trail // 2:
        if trail % cand == 0 and 4 * c * cand * itemsize <= budget_bytes:
            best = cand
        cand += 128
    # TODO(synk): if trail has no 128-multiple divisor that fits, we fall back
    # to the full trail (correct, may exceed the scoped VMEM default for huge
    # inputs); a BoundedSlice edge-tile would handle that case.
    return best if best is not None else trail


def split_forward(x, n_channels, dim=1):
    """Pallas equivalent of torch.split(x, n_channels, dim).
    Returns a tuple of arrays of size `n_channels` along `dim`
    (last chunk smaller if the dim does not divide evenly)."""
    shape = x.shape
    dim = dim % x.ndim
    c = shape[dim]

    sizes = [n_channels] * (c // n_channels)
    if c % n_channels:
        sizes.append(c % n_channels)
    sizes = tuple(sizes)

    lead = int(math.prod(shape[:dim]))        # prod(()) == 1
    trail = int(math.prod(shape[dim + 1:]))

    # Free, layout-preserving reshape (row-major contiguous) -> (lead, C, trail).
    x3 = x.reshape(lead, c, trail)

    tt = _choose_trail_tile(c, trail, x.dtype.itemsize)
    n_tt = trail // tt if (tt > 0 and trail % tt == 0) else 1
    if trail % tt != 0:
        tt = trail

    grid = (lead, n_tt)

    out_shapes = tuple(
        jax.ShapeDtypeStruct((lead, sz, trail), x.dtype) for sz in sizes)
    out_specs = [
        pl.BlockSpec((1, sz, tt), lambda i, t: (i, 0, t)) for sz in sizes]

    outs = pl.pallas_call(
        functools.partial(_split_kernel, sizes=sizes),
        out_shape=out_shapes,
        grid_spec=pltpu.PrefetchScalarGridSpec(
            num_scalar_prefetch=0,
            grid=grid,
            in_specs=[pl.BlockSpec((1, c, tt), lambda i, t: (i, 0, t))],
            out_specs=out_specs,
        ),
        compiler_params=pltpu.CompilerParams(
            dimension_semantics=("parallel", "parallel")),
    )(x3)

    # Reshape each chunk back to the original rank (free for contiguous arrays).
    result = []
    for sz, o in zip(sizes, outs):
        result.append(o.reshape(shape[:dim] + (sz,) + shape[dim + 1:]))
    return tuple(result)


def _reference(x, n_channels, dim=1):
    c = x.shape[dim]
    chunks = []
    for start in range(0, c, n_channels):
        idx = [slice(None)] * x.ndim
        idx[dim] = slice(start, min(start + n_channels, c))
        chunks.append(x[tuple(idx)])
    return tuple(chunks)


if __name__ == "__main__":
    key = jax.random.PRNGKey(0)
    k1, k2 = jax.random.split(key)
    n_channels = 4

    # Case 1: 3-D volume feature map (MPRNet3D usage), evenly divisible channels.
    x5 = jax.random.normal(k1, (2, 12, 8, 8, 8), dtype=jnp.float32)
    outs5 = jax.block_until_ready(split_forward(x5, n_channels, dim=1))
    refs5 = _reference(x5, n_channels, dim=1)
    assert len(outs5) == len(refs5) == 3
    for o, r in zip(outs5, refs5):
        assert o.shape == r.shape, (o.shape, r.shape)
        assert bool(jnp.array_equal(o, r))

    # Case 2: 4-D input with a remainder chunk (torch.split: 10 -> [4, 4, 2]).
    x4 = jax.random.normal(k2, (2, 10, 16, 16), dtype=jnp.float32)
    outs4 = jax.block_until_ready(split_forward(x4, n_channels, dim=1))
    refs4 = _reference(x4, n_channels, dim=1)
    assert len(outs4) == len(refs4) == 3
    for o, r in zip(outs4, refs4):
        assert o.shape == r.shape, (o.shape, r.shape)
        assert bool(jnp.array_equal(o, r))

    print("KERNEL_OK")
</pallas_src>

<mosaic_0001>
module attributes {stable_mosaic.version = 11 : i64} {
  func.func @_split_kernel(%arg0: i32, %arg1: i32, %arg2: memref<1x12x512xf32, #tpu.memory_space<vmem>>, %arg3: memref<1x4x512xf32, #tpu.memory_space<vmem>>, %arg4: memref<1x4x512xf32, #tpu.memory_space<vmem>>, %arg5: memref<1x4x512xf32, #tpu.memory_space<vmem>>) attributes {dimension_semantics = [#tpu.dimension_semantics<parallel>, #tpu.dimension_semantics<parallel>], iteration_bounds = array<i64: 2, 1>, scalar_prefetch = 0 : i64, scratch_operands = 0 : i64, tpu.core_type = #tpu.core_type<tc>, window_params = [{transform_indices = @transform_0, window_bounds = array<i64: 1, 12, 512>}, {transform_indices = @transform_1, window_bounds = array<i64: 1, 4, 512>}, {transform_indices = @transform_2, window_bounds = array<i64: 1, 4, 512>}, {transform_indices = @transform_3, window_bounds = array<i64: 1, 4, 512>}]} {
    %c0 = arith.constant 0 : index
    %c0_0 = arith.constant 0 : index
    %c0_1 = arith.constant 0 : index
    %0 = vector.load %arg2[%c0, %c0_0, %c0_1] : memref<1x12x512xf32, #tpu.memory_space<vmem>>, vector<1x4x512xf32>
    %c0_2 = arith.constant 0 : index
    %c0_3 = arith.constant 0 : index
    %c0_4 = arith.constant 0 : index
    %1 = vector.load %arg3[%c0_2, %c0_3, %c0_4] : memref<1x4x512xf32, #tpu.memory_space<vmem>>, vector<1x4x512xf32>
    tpu.vector_store %arg3[%c0_2, %c0_3, %c0_4], %0 {strides = array<i32>} : memref<1x4x512xf32, #tpu.memory_space<vmem>>, vector<1x4x512xf32>,
    %c0_5 = arith.constant 0 : index
    %c4 = arith.constant 4 : index
    %c0_6 = arith.constant 0 : index
    %2 = vector.load %arg2[%c0_5, %c4, %c0_6] : memref<1x12x512xf32, #tpu.memory_space<vmem>>, vector<1x4x512xf32>
    %c0_7 = arith.constant 0 : index
    %c0_8 = arith.constant 0 : index
    %c0_9 = arith.constant 0 : index
    %3 = vector.load %arg4[%c0_7, %c0_8, %c0_9] : memref<1x4x512xf32, #tpu.memory_space<vmem>>, vector<1x4x512xf32>
    tpu.vector_store %arg4[%c0_7, %c0_8, %c0_9], %2 {strides = array<i32>} : memref<1x4x512xf32, #tpu.memory_space<vmem>>, vector<1x4x512xf32>,
    %c0_10 = arith.constant 0 : index
    %c8 = arith.constant 8 : index
    %c0_11 = arith.constant 0 : index
    %4 = vector.load %arg2[%c0_10, %c8, %c0_11] : memref<1x12x512xf32, #tpu.memory_space<vmem>>, vector<1x4x512xf32>
    %c0_12 = arith.constant 0 : index
    %c0_13 = arith.constant 0 : index
    %c0_14 = arith.constant 0 : index
    %5 = vector.load %arg5[%c0_12, %c0_13, %c0_14] : memref<1x4x512xf32, #tpu.memory_space<vmem>>, vector<1x4x512xf32>
    tpu.vector_store %arg5[%c0_12, %c0_13, %c0_14], %4 {strides = array<i32>} : memref<1x4x512xf32, #tpu.memory_space<vmem>>, vector<1x4x512xf32>,
    return
  }
  func.func @transform_0(%arg0: i32, %arg1: i32) -> (i32, i32, i32) {
    %c0_i32 = arith.constant 0 : i32
    %c0_i32_0 = arith.constant 0 : i32
    return %arg0, %c0_i32, %arg1 : i32, i32, i32
  }
  func.func @transform_1(%arg0: i32, %arg1: i32) -> (i32, i32, i32) {
    %c0_i32 = arith.constant 0 : i32
    %c0_i32_0 = arith.constant 0 : i32
    return %arg0, %c0_i32, %arg1 : i32, i32, i32
  }
  func.func @transform_2(%arg0: i32, %arg1: i32) -> (i32, i32, i32) {
    %c0_i32 = arith.constant 0 : i32
    %c0_i32_0 = arith.constant 0 : i32
    return %arg0, %c0_i32, %arg1 : i32, i32, i32
  }
  func.func @transform_3(%arg0: i32, %arg1: i32) -> (i32, i32, i32) {
    %c0_i32 = arith.constant 0 : i32
    %c0_i32_0 = arith.constant 0 : i32
    return %arg0, %c0_i32, %arg1 : i32, i32, i32
  }
}

</mosaic_0001>

<bundles_post_ra>
// kernel: tpu_custom_call.1
= control target key start
LH: loop header
LB: loop body
LE: loop exit
PB: predicated region body
PF: predicated region fallthrough
CT: control target
= control target key end

     0   :  { %9 = vsyncpa [#allocation3], 0  ;;  %s893_s0 = inlined_call_operand.vmem [shape: f32[2,12,512], index: 0, kind: input, shape index: {}]   ;;  %s894_s1 = inlined_call_operand.hbm [shape: f32[2,4,512], index: 1, kind: output, shape index: {0}]   ;;  %s895_s2 = inlined_call_operand.hbm [shape: f32[2,4,512], index: 2, kind: output, shape index: {1}]   ;;  %s896_s3 = inlined_call_operand.hbm [shape: f32[2,4,512], index: 3, kind: output, shape index: {2}]  }
   0x1   :  { %11 = vsyncpa [#allocation3 + $0x1], 0 }
   0x2   :  { %12 = vsyncpa [#allocation5], 0 }
   0x3   :  { %14 = vsyncpa [#allocation5 + $0x1], 0  ;;  %s721_s12 = smov 0   ;;  %s723_s13 = smov 0  }
   0x4   :  { %s725_s14 = smov 0   ;;  %s727_s15 = smov 0  }
   0x5   :  { %s729_s16 = smov 0   ;;  %s731_s17 = smov 0  }
   0x6 LB: > { %s468_s18 = sadd.s32 4294967295, %s696_s17   ;;  %s897_s19 = sadd.s32 4294967294, %s696_s17   ;;  %s696_s17 = sphi %s731_s17, %s20_s17   ;;  %s692_s16 = sphi %s729_s16, %s907_s16   ;;  %s688_s15 = sphi %s727_s15, %s906_s15   ;;  %s684_s14 = sphi %s725_s14, %s905_s14   ;;  %s680_s13 = sphi %s723_s13, %s904_s13   ;;  %s676_s12 = sphi %s721_s12, %s903_s12  }
   0x7   : > { %s32_s20 = sadd.s32 1, %s692_s16  ;;  %s69_s21 = sadd.s32 1, %s684_s14 }
   0x8   : > { %p34_p0 = scmp.ge.s32.totalorder %s32_s20, 2  ;;  %p79_p1 = scmp.ne.s32.totalorder %s684_s14, %s680_s13 }
   0x9   : > { %p80_p2 = scmp.eq.s32.totalorder %s468_s18, 1  ;;  %p85_p3 = scmp.ne.s32.totalorder %s680_s13, %s676_s12 }
   0xa   : > { %s909_s20 = smov (%p34_p0, %s32_s20), 0  ;;  %p86_p5 = scmp.eq.s32.totalorder %s897_s19, 1 }
   0xb   : > { %p761_p4 = por %p80_p2, %p79_p1  ;;  %s64_s23 = ssub.s32 %s692_s16, %s909_s20 }
   0xc   : > { %p472_p6 = scmp.ge.s32.totalorder %s696_s17, 1  ;;  %p67_p7 = scmp.eq.s32.totalorder %s64_s23, 0 }
   0xd   : > { %p770_p8 = por %p86_p5, %p85_p3  ;;  %p173_p9 = scmp.lt.s32.totalorder %s696_s17, 3 }
   0xe   : > { %s776_s25 = scalar_select %p67_p7, %s684_s14, %s69_s21  }
   0xf   : > { %p174_p10 = pnand %p472_p6, %p173_p9 }
  0x10   : > { %s898_s26 = sand.u32 (!%p174_p10), 1, %s680_s13   ;;  %p212_p11 = scmp.lt.s32.totalorder (!%p174_p10), %s688_s15, 1 }
  0x11   : > { %177 = sbr.rel (%p174_p10) target bundleno = 93 (0x5d), region = 24  ;;  %s473_s27 = sshll.u32 (!%p174_p10), %s898_s26, 4 }
  0x12   : > { %s783_s29 = sand.u32 (!%p174_p10), 1, %s468_s18   ;;  %s203_s4 = scalar_lea.vmem (!%p174_p10), [#allocation4], %s473_s27 }
  0x13   : > { %s309_s5 = sshll.u32 (!%p174_p10), %s203_s4, 4  ;;  %s196_s9 = scalar_lea.vmem (!%p174_p10), [#allocation2], %s473_s27  ;;  %s788_s5 = int_to_ptr.vmem [resolvable:$true] %s309_s5 }
  0x14   : > { %s293_s10 = sshll.u32 (!%p174_p10), %s196_s9, 4  ;;  %s792_s11 = scalar_lea.vmem (!%p174_p10), [#allocation6], %s473_s27  ;;  %s790_s10 = int_to_ptr.vmem [resolvable:$true] %s293_s10 }
  0x15   : > { %s325_s18 = sshll.u32 (!%p174_p10), %s792_s11, 4  ;;  %s796_s21 = sshll.u32 (!%p174_p10), %s688_s15, 8  ;;  %s798_s18 = int_to_ptr.vmem [resolvable:$true] %s325_s18 }
  0x16   : > { %s213_s28 = scalar_select %p212_p11, %s688_s15, 1 }
  0x17   : > { %s564_s6 = scalar_lea.vmem %s788_s5, 256  ;;  %s698_s27 = smov [#allocation4]  }
  0x18   : > { %s489_s30 = sshll.u32 %s213_s28, 6  ;;  %p565_p12 = scmp.ne.s32.totalorder %s788_s5, %s564_s6 }
  0x19   : > { %s219_s8 = scalar_lea.vmem %s893_s0, %s489_s30  ;;  %s307_s30 = scalar_lea.hbm %s895_s2, %s796_s21 }
  0x1a   : > { %v558_v0 = vld [vmem:[%s219_s8 + $0x4] ss:$8 sps:$4 sm:$0xff]   ;;  %v559_v1 = vld [vmem:[%s219_s8 + $0x14] ss:$8 sps:$4 sm:$0xff]   ;;  %v560_v2 = vld [vmem:[%s219_s8] ss:$8 sps:$4 sm:$0xff]   ;;  %p566_p13 = pnand %p565_p12, %p761_p4 }
  0x1b   : > { %250 = vst [vmem:[%s203_s4] sm:$0xff] %v558_v0  ;;  %251 = vst [vmem:[%s203_s4 + $0x8] sm:$0xff] %v559_v1  ;;  %v561_v3 = vld [vmem:[%s219_s8 + $0x10] ss:$8 sps:$4 sm:$0xff]   ;;  %v562_v4 = vld [vmem:[%s219_s8 + $0x20] ss:$8 sps:$4 sm:$0xff]   ;;  %s272_s4 = scalar_lea.sflag [#allocation5], %s783_s29 }
  0x1c   : > { %236 = vst [vmem:[%s196_s9] sm:$0xff] %v560_v2  ;;  %237 = vst [vmem:[%s196_s9 + $0x8] sm:$0xff] %v561_v3  ;;  %v563_v5 = vld [vmem:[%s219_s8 + $0x30] ss:$8 sps:$4 sm:$0xff]   ;;  %p567_p0 = pneg %p566_p13  ;;  %s568_s7 = sshll.u32 %s698_s27, 4  ;;  %s569_s7 = int_to_ptr.vmem [resolvable:$false] %s568_s7 }
  0x1d   : > { %264 = vst [vmem:[%s792_s11] sm:$0xff] %v562_v4  ;;  %s570_s15 = scalar_lea.vmem %s569_s7, 512  ;;  %p571_p1 = scmp.lt.s32.totalorder %s788_s5, %s569_s7 }
  0x1e   : > { %p572_p2 = scmp.lt.s32.totalorder %s570_s15, %s564_s6 }
  0x20   : > { %p573_p3 = por %p572_p2, %p571_p1 }
  0x22   : > { %p574_p5 = pnand %p573_p3, %p567_p0 }
  0x24   : > { %577 = shalt.err (!%p574_p5)
}
  0x25   : > { %s578_s8 = scalar_lea.hbm %s307_s30, 256  ;;  %s582_s28 = scalar_lea.hbm %s895_s2, 512 }
  0x26   : > { %p579_p6 = scmp.ne.s32.totalorder %s307_s30, %s578_s8  ;;  %p583_p10 = scmp.lt.s32.totalorder %s307_s30, %s895_s2 }
  0x27   : > { %p584_p11 = scmp.lt.s32.totalorder %s582_s28, %s578_s8 }
  0x28   : > { %p580_p7 = pnand %p579_p6, %p761_p4 }
  0x29   : > { %p585_p12 = por %p584_p11, %p583_p10 }
  0x2a   : > { %p581_p9 = pneg %p580_p7 }
  0x2c   : > { %p586_p13 = pnand %p585_p12, %p581_p9 }
  0x2e   : > { %589 = shalt.err (!%p586_p13)
}
  0x2f   : > { %494 = dma.vmem_to_hbm [thread:$0]  (%p761_p4), %s788_s5, 256, %s307_s30, %s272_s4   ;;  %265 = vst [vmem:[%s792_s11 + $0x8] sm:$0xff] %v563_v5 }
  0x30   : > { %s291_s6 = scalar_lea.hbm %s894_s1, %s796_s21  ;;  %s901_s27 = sand.u32 1, %s680_s13  }
  0x31   : > { %s267_s7 = scalar_lea.sflag [#allocation3], %s901_s27  ;;  %s590_s15 = scalar_lea.vmem %s790_s10, 256 }
  0x32   : > { %p591_p0 = scmp.ne.s32.totalorder %s790_s10, %s590_s15  ;;  %s699_s8 = smov [#allocation2]  }
  0x33   : > { %s594_s9 = sshll.u32 %s699_s8, 4  ;;  %s595_s9 = int_to_ptr.vmem [resolvable:$false] %s594_s9 }
  0x34   : > { %p592_p1 = pnand %p591_p0, %p761_p4  ;;  %s596_s23 = scalar_lea.vmem %s595_s9, 512 }
  0x35   : > { %p597_p3 = scmp.lt.s32.totalorder %s790_s10, %s595_s9  ;;  %p598_p5 = scmp.lt.s32.totalorder %s596_s23, %s590_s15 }
  0x36   : > { %p593_p2 = pneg %p592_p1 }
  0x37   : > { %p599_p6 = por %p598_p5, %p597_p3 }
  0x39   : > { %p600_p7 = pnand %p599_p6, %p593_p2 }
  0x3b   : > { %603 = shalt.err (!%p600_p7)
}
  0x3c   : > { %s604_s5 = scalar_lea.hbm %s291_s6, 256  ;;  %s608_s28 = scalar_lea.hbm %s894_s1, 512 }
  0x3d   : > { %p605_p9 = scmp.ne.s32.totalorder %s291_s6, %s604_s5  ;;  %p609_p12 = scmp.lt.s32.totalorder %s291_s6, %s894_s1 }
  0x3e   : > { %p610_p13 = scmp.lt.s32.totalorder %s608_s28, %s604_s5 }
  0x3f   : > { %p606_p10 = pnand %p605_p9, %p761_p4 }
  0x40   : > { %p611_p0 = por %p610_p13, %p609_p12 }
  0x41   : > { %p607_p11 = pneg %p606_p10 }
  0x43   : > { %p612_p1 = pnand %p611_p0, %p607_p11 }
  0x45   : > { %615 = shalt.err (!%p612_p1)
}
  0x46   : > { %493 = dma.vmem_to_hbm [thread:$0]  (%p761_p4), %s790_s10, 256, %s291_s6, %s267_s7  }
  0x47   : > { %s323_s8 = scalar_lea.hbm %s896_s3, %s796_s21  ;;  %s616_s9 = scalar_lea.vmem %s798_s18, 256 }
  0x48   : > { %p617_p2 = scmp.ne.s32.totalorder %s798_s18, %s616_s9  ;;  %s700_s23 = smov [#allocation6]  }
  0x49   : > { %s620_s5 = sshll.u32 %s700_s23, 4  ;;  %s621_s5 = int_to_ptr.vmem [resolvable:$false] %s620_s5 }
  0x4a   : > { %p618_p3 = pnand %p617_p2, %p761_p4  ;;  %s622_s11 = scalar_lea.vmem %s621_s5, 512 }
  0x4b   : > { %p623_p6 = scmp.lt.s32.totalorder %s798_s18, %s621_s5  ;;  %p624_p7 = scmp.lt.s32.totalorder %s622_s11, %s616_s9 }
  0x4c   : > { %p619_p5 = pneg %p618_p3 }
  0x4d   : > { %p625_p9 = por %p624_p7, %p623_p6 }
  0x4f   : > { %p626_p10 = pnand %p625_p9, %p619_p5 }
  0x51   : > { %629 = shalt.err (!%p626_p10)
}
  0x52   : > { %s630_s30 = scalar_lea.hbm %s323_s8, 256  ;;  %s634_s6 = scalar_lea.hbm %s896_s3, 512 }
  0x53   : > { %p631_p11 = scmp.ne.s32.totalorder %s323_s8, %s630_s30  ;;  %p635_p0 = scmp.lt.s32.totalorder %s323_s8, %s896_s3 }
  0x54   : > { %p636_p1 = scmp.lt.s32.totalorder %s634_s6, %s630_s30 }
  0x55   : > { %p632_p12 = pnand %p631_p11, %p761_p4 }
  0x56   : > { %p637_p2 = por %p636_p1, %p635_p0 }
  0x57   : > { %p633_p13 = pneg %p632_p12 }
  0x59   : > { %p638_p3 = pnand %p637_p2, %p633_p13 }
  0x5b   : > { %641 = shalt.err (!%p638_p3)
}
  0x5c   : > { %495 = dma.vmem_to_hbm [thread:$0]  (%p761_p4), %s798_s18, 256, %s323_s8, %s272_s4  }
  0x5d PF: > { %p509_p5 = scmp.ge.s32.totalorder %s696_s17, 2  ;;  %s337_s19 = sand.u32 1, %s676_s12  }
  0x5e   : > { %s338_s26 = scalar_lea.sflag [#allocation3], %s337_s19 }
  0x5f   : > { %p500_p6 = pnand %p509_p5, %p770_p8 }
  0x61   : > { %p501_p7 = pneg %p500_p6 }
  0x63   : > { %667 = dma.done.wait (%p501_p7), %s338_s26, 256  }
  0x64   : > { %669 = vsyncadd (%p501_p7), %s338_s26, 4294967040  ;;  %s902_s27 = sadd.s32 4294967294, %s696_s17  }
  0x65   : > { %s346_s15 = sand.u32 1, %s902_s27  }
  0x66   : > { %s347_s22 = scalar_lea.sflag [#allocation5], %s346_s15 }
  0x67   : > { %671 = dma.done.wait (%p501_p7), %s347_s22, 512  }
  0x68   : > { %673 = vsyncadd (%p501_p7), %s347_s22, 4294966784  ;;  %s20_s17 = sadd.s32 1, %s696_s17   ;;  %s903_s12 = smov %s680_s13 }
  0x69   : > { %p17_p4 = scmp.ge.s32.totalorder %s20_s17, 4   ;;  %s904_s13 = smov %s684_s14 }
  0x6a   : > { %s905_s14 = smov %s776_s25  ;;  %s906_s15 = smov %s692_s16 }
  0x6b   : > { %s907_s16 = smov %s909_s20  ;;  %19 = sbr.rel (!%p17_p4) target bundleno = 6 (0x6), region = 91 }
  0x70   :  { %361 = vsyncpa [#allocation3], 1 }
  0x71   :  { %363 = vsyncpa [#allocation3 + $0x1], 1 }
  0x72   :  { %364 = vsyncpa [#allocation5], 1 }
  0x73   :  { %366 = vsyncpa [#allocation5 + $0x1], 1 }

</bundles_post_ra>
